<compile_context>
chip_gen: v6e
topology: v6e:2x2x1
jax: 0.10.0
libtpu: 0.0.40
codegen_flags: <defaults>
</compile_context>

<pallas_src>
import functools

import jax
import jax.numpy as jnp
from jax.experimental import pallas as pl
from jax.experimental.pallas import tpu as pltpu


def mlp_planner_kernel(
    x_ref,
    w1_ref, b1_ref,
    w2_ref, b2_ref,
    w3_ref, b3_ref,
    w4_ref, b4_ref,
    o_ref,
):
    # In-kernel cast fp32 -> bf16 (VPU), feeding the MXU with fp32 accumulation.
    x = x_ref[...].astype(jnp.bfloat16)

    # Layer 1: Linear(40 -> H) + ReLU  (Dropout = identity in eval mode)
    h = jnp.dot(x, w1_ref[...], preferred_element_type=jnp.float32)
    h = jnp.maximum(h.astype(jnp.bfloat16) + b1_ref[...], 0)

    # Layer 2: Linear(H -> H) + ReLU
    h = jnp.dot(h, w2_ref[...], preferred_element_type=jnp.float32)
    h = jnp.maximum(h.astype(jnp.bfloat16) + b2_ref[...], 0)

    # Layer 3: Linear(H -> H) + ReLU
    h = jnp.dot(h, w3_ref[...], preferred_element_type=jnp.float32)
    h = jnp.maximum(h.astype(jnp.bfloat16) + b3_ref[...], 0)

    # Output head: Linear(H -> n_waypoints*2), fp32 epilogue.
    out = jnp.dot(h, w4_ref[...], preferred_element_type=jnp.float32) + b4_ref[...]
    o_ref[...] = out.astype(o_ref.dtype)


def _round_up(x, m):
    return ((x + m - 1) // m) * m


def _pick_tile(B, tb_max=2048):
    """Large tiles to amortize per-step overhead, >=2 steps when possible
    (v7x megacore), bounded padding waste, sublane-aligned (fp32 => 8)."""
    if B <= 16:
        return max(8, _round_up(B, 8))
    n_steps = max(2, pl.cdiv(B, tb_max))
    return min(tb_max, _round_up(pl.cdiv(B, n_steps), 8))


def prepare_params(params):
    """One-time prep (hoisted out of the per-call path): bf16 weights for the
    MXU, bf16 hidden biases for the bf16 epilogue, fp32 bias on the head."""
    w1, b1, w2, b2, w3, b3, w4, b4 = params
    return (
        w1.astype(jnp.bfloat16), b1.astype(jnp.bfloat16),
        w2.astype(jnp.bfloat16), b2.astype(jnp.bfloat16),
        w3.astype(jnp.bfloat16), b3.astype(jnp.bfloat16),
        w4.astype(jnp.bfloat16), b4.astype(jnp.float32),
    )


def mlp_planner_forward(track_left, track_right, prepared, n_waypoints: int = 3):
    """track_left/track_right: (B, n_track, 2) float32 -> (B, n_waypoints, 2)."""
    B, n_track, _ = track_left.shape
    in_dim = 2 * n_track * 2                       # 40

    w1, b1, w2, b2, w3, b3, w4, b4 = prepared
    hidden = w1.shape[1]
    out_dim = w4.shape[1]

    # x = cat([left, right], dim=1).view(B, -1): stays fp32 (no convert pass),
    # cheap layout-only work that fuses into input prep.
    x = jnp.concatenate([track_left, track_right], axis=1).reshape(B, in_dim)
    x = x.astype(jnp.float32)

    TB = _pick_tile(B)
    B_pad = _round_up(B, TB)
    if B_pad != B:
        x = jnp.pad(x, ((0, B_pad - B), (0, 0)))   # zero-padded tail, sliced off below
    grid = (B_pad // TB,)

    def batch_spec(width):
        return pl.BlockSpec((TB, width), lambda i: (i, 0))

    def const_spec(arr):
        # Constant block index -> DMA'd once, resident in VMEM across batch tiles.
        return pl.BlockSpec(arr.shape, lambda i: (0, 0))

    flops = 2 * B_pad * (in_dim * hidden + 2 * hidden * hidden + hidden * out_dim)
    bytes_accessed = (
        B_pad * in_dim * 4                                        # fp32 input
        + B_pad * out_dim * 4                                     # fp32 output
        + (in_dim * hidden + 2 * hidden * hidden
           + hidden * out_dim) * 2                                # bf16 weights
        + 3 * hidden * 2 + out_dim * 4)                           # biases

    out = pl.pallas_call(
        mlp_planner_kernel,
        out_shape=jax.ShapeDtypeStruct((B_pad, out_dim), jnp.float32),
        grid=grid,
        in_specs=[
            batch_spec(in_dim),
            const_spec(w1), const_spec(b1),
            const_spec(w2), const_spec(b2),
            const_spec(w3), const_spec(b3),
            const_spec(w4), const_spec(b4),
        ],
        out_specs=batch_spec(out_dim),
        compiler_params=pltpu.CompilerParams(
            dimension_semantics=("parallel",)),
        cost_estimate=pl.CostEstimate(
            flops=flops, transcendentals=0, bytes_accessed=bytes_accessed),
    )(x, w1, b1, w2, b2, w3, b3, w4, b4)

    return out[:B].reshape(B, n_waypoints, 2)


def init_params(key, n_track=10, n_waypoints=3, hidden_dim=128):
    """Deterministic synthetic init matching nn.Linear shapes.

    Weights stored transposed relative to PyTorch: (in_features, out_features).
    Biases stored as (1, out_features) for TPU-friendly 2D layout.
    """
    input_dim = 2 * n_track * 2        # 40
    out_dim = n_waypoints * 2          # 6
    dims = [(input_dim, hidden_dim),
            (hidden_dim, hidden_dim),
            (hidden_dim, hidden_dim),
            (hidden_dim, out_dim)]
    params = []
    keys = jax.random.split(key, 2 * len(dims))
    for i, (fan_in, fan_out) in enumerate(dims):
        bound = 1.0 / jnp.sqrt(fan_in)  # PyTorch default Linear init range
        w = jax.random.uniform(keys[2 * i], (fan_in, fan_out),
                               minval=-bound, maxval=bound, dtype=jnp.float32)
        b = jax.random.uniform(keys[2 * i + 1], (1, fan_out),
                               minval=-bound, maxval=bound, dtype=jnp.float32)
        params.extend([w, b])
    return tuple(params)


if __name__ == "__main__":
    n_track, n_waypoints, hidden_dim = 10, 3, 128
    B = 2

    key = jax.random.PRNGKey(0)
    k_params, k_left, k_right = jax.random.split(key, 3)

    params = init_params(k_params, n_track, n_waypoints, hidden_dim)
    prepared = prepare_params(params)          # one-time: bf16 weights/biases
    track_left = jax.random.normal(k_left, (B, n_track, 2), dtype=jnp.float32)
    track_right = jax.random.normal(k_right, (B, n_track, 2), dtype=jnp.float32)

    fwd = jax.jit(functools.partial(mlp_planner_forward, n_waypoints=n_waypoints))
    out = jax.block_until_ready(fwd(track_left, track_right, prepared))

    # Reference in plain JAX with the same bf16 rounding / fp32 accumulation.
    w1, b1, w2, b2, w3, b3, w4, b4 = prepared
    x = jnp.concatenate([track_left, track_right], axis=1).reshape(B, -1)
    xb = x.astype(jnp.bfloat16)

    def hidden_layer(h, w_bf, b_bf):
        a = jnp.dot(h, w_bf, preferred_element_type=jnp.float32)
        return jnp.maximum(a.astype(jnp.bfloat16) + b_bf, 0)

    h = hidden_layer(xb, w1, b1)
    h = hidden_layer(h, w2, b2)
    h = hidden_layer(h, w3, b3)
    ref = (jnp.dot(h, w4, preferred_element_type=jnp.float32) + b4
           ).reshape(B, n_waypoints, 2)

    assert out.shape == (B, n_waypoints, 2), out.shape
    assert jnp.allclose(out, ref, atol=2e-2, rtol=2e-2), "mismatch vs reference"

    print("KERNEL_OK")
</pallas_src>

<mosaic_0001>
module attributes {stable_mosaic.version = 11 : i64} {
  func.func @mlp_planner_kernel(%arg0: i32, %arg1: memref<8x40xf32, #tpu.memory_space<vmem>>, %arg2: memref<40x128xbf16, #tpu.memory_space<vmem>>, %arg3: memref<1x128xbf16, #tpu.memory_space<vmem>>, %arg4: memref<128x128xbf16, #tpu.memory_space<vmem>>, %arg5: memref<1x128xbf16, #tpu.memory_space<vmem>>, %arg6: memref<128x128xbf16, #tpu.memory_space<vmem>>, %arg7: memref<1x128xbf16, #tpu.memory_space<vmem>>, %arg8: memref<128x6xbf16, #tpu.memory_space<vmem>>, %arg9: memref<1x6xf32, #tpu.memory_space<vmem>>, %arg10: memref<8x6xf32, #tpu.memory_space<vmem>>) attributes {dimension_semantics = [#tpu.dimension_semantics<parallel>], iteration_bounds = array<i64: 1>, scalar_prefetch = 0 : i64, scratch_operands = 0 : i64, tpu.core_type = #tpu.core_type<tc>, window_params = [{transform_indices = @transform_0, window_bounds = array<i64: 8, 40>}, {pipeline_mode = #tpu.pipeline_mode<synchronous>, transform_indices = @transform_1, window_bounds = array<i64: 40, 128>}, {pipeline_mode = #tpu.pipeline_mode<synchronous>, transform_indices = @transform_2, window_bounds = array<i64: 1, 128>}, {pipeline_mode = #tpu.pipeline_mode<synchronous>, transform_indices = @transform_3, window_bounds = array<i64: 128, 128>}, {pipeline_mode = #tpu.pipeline_mode<synchronous>, transform_indices = @transform_4, window_bounds = array<i64: 1, 128>}, {pipeline_mode = #tpu.pipeline_mode<synchronous>, transform_indices = @transform_5, window_bounds = array<i64: 128, 128>}, {pipeline_mode = #tpu.pipeline_mode<synchronous>, transform_indices = @transform_6, window_bounds = array<i64: 1, 128>}, {pipeline_mode = #tpu.pipeline_mode<synchronous>, transform_indices = @transform_7, window_bounds = array<i64: 128, 6>}, {pipeline_mode = #tpu.pipeline_mode<synchronous>, transform_indices = @transform_8, window_bounds = array<i64: 1, 6>}, {transform_indices = @transform_9, window_bounds = array<i64: 8, 6>}]} {
    %c0 = arith.constant 0 : index
    %c0_0 = arith.constant 0 : index
    %0 = vector.load %arg1[%c0, %c0_0] : memref<8x40xf32, #tpu.memory_space<vmem>>, vector<8x40xf32>
    %1 = arith.truncf %0 : vector<8x40xf32> to vector<8x40xbf16>
    %c0_1 = arith.constant 0 : index
    %c0_2 = arith.constant 0 : index
    %2 = vector.load %arg2[%c0_1, %c0_2] : memref<40x128xbf16, #tpu.memory_space<vmem>>, vector<40x128xbf16>
    %cst = arith.constant dense<0.000000e+00> : vector<8x128xf32>
    %3 = tpu.matmul %1, %2, %cst {dimension_numbers = #tpu.dot_dimension_numbers<[1], [0], [0], [1], [0, 0, 1, 1], [], []>} : vector<8x40xbf16>, vector<40x128xbf16>, vector<8x128xf32> -> vector<8x128xf32>
    %4 = arith.truncf %3 : vector<8x128xf32> to vector<8x128xbf16>
    %c0_3 = arith.constant 0 : index
    %c0_4 = arith.constant 0 : index
    %5 = vector.load %arg3[%c0_3, %c0_4] : memref<1x128xbf16, #tpu.memory_space<vmem>>, vector<1x128xbf16>
    %6 = vector.broadcast %5 : vector<1x128xbf16> to vector<8x128xbf16>
    %7 = arith.addf %4, %6 : vector<8x128xbf16>
    %cst_5 = arith.constant 0.000000e+00 : bf16
    %8 = vector.broadcast %cst_5 : bf16 to vector<8x128xbf16>
    %9 = arith.maximumf %7, %8 : vector<8x128xbf16>
    %c0_6 = arith.constant 0 : index
    %c0_7 = arith.constant 0 : index
    %10 = vector.load %arg4[%c0_6, %c0_7] : memref<128x128xbf16, #tpu.memory_space<vmem>>, vector<128x128xbf16>
    %cst_8 = arith.constant dense<0.000000e+00> : vector<8x128xf32>
    %11 = tpu.matmul %9, %10, %cst_8 {dimension_numbers = #tpu.dot_dimension_numbers<[1], [0], [0], [1], [0, 0, 1, 1], [], []>} : vector<8x128xbf16>, vector<128x128xbf16>, vector<8x128xf32> -> vector<8x128xf32>
    %12 = arith.truncf %11 : vector<8x128xf32> to vector<8x128xbf16>
    %c0_9 = arith.constant 0 : index
    %c0_10 = arith.constant 0 : index
    %13 = vector.load %arg5[%c0_9, %c0_10] : memref<1x128xbf16, #tpu.memory_space<vmem>>, vector<1x128xbf16>
    %14 = vector.broadcast %13 : vector<1x128xbf16> to vector<8x128xbf16>
    %15 = arith.addf %12, %14 : vector<8x128xbf16>
    %cst_11 = arith.constant 0.000000e+00 : bf16
    %16 = vector.broadcast %cst_11 : bf16 to vector<8x128xbf16>
    %17 = arith.maximumf %15, %16 : vector<8x128xbf16>
    %c0_12 = arith.constant 0 : index
    %c0_13 = arith.constant 0 : index
    %18 = vector.load %arg6[%c0_12, %c0_13] : memref<128x128xbf16, #tpu.memory_space<vmem>>, vector<128x128xbf16>
    %cst_14 = arith.constant dense<0.000000e+00> : vector<8x128xf32>
    %19 = tpu.matmul %17, %18, %cst_14 {dimension_numbers = #tpu.dot_dimension_numbers<[1], [0], [0], [1], [0, 0, 1, 1], [], []>} : vector<8x128xbf16>, vector<128x128xbf16>, vector<8x128xf32> -> vector<8x128xf32>
    %20 = arith.truncf %19 : vector<8x128xf32> to vector<8x128xbf16>
    %c0_15 = arith.constant 0 : index
    %c0_16 = arith.constant 0 : index
    %21 = vector.load %arg7[%c0_15, %c0_16] : memref<1x128xbf16, #tpu.memory_space<vmem>>, vector<1x128xbf16>
    %22 = vector.broadcast %21 : vector<1x128xbf16> to vector<8x128xbf16>
    %23 = arith.addf %20, %22 : vector<8x128xbf16>
    %cst_17 = arith.constant 0.000000e+00 : bf16
    %24 = vector.broadcast %cst_17 : bf16 to vector<8x128xbf16>
    %25 = arith.maximumf %23, %24 : vector<8x128xbf16>
    %c0_18 = arith.constant 0 : index
    %c0_19 = arith.constant 0 : index
    %26 = vector.load %arg8[%c0_18, %c0_19] : memref<128x6xbf16, #tpu.memory_space<vmem>>, vector<128x6xbf16>
    %cst_20 = arith.constant dense<0.000000e+00> : vector<8x6xf32>
    %27 = tpu.matmul %25, %26, %cst_20 {dimension_numbers = #tpu.dot_dimension_numbers<[1], [0], [0], [1], [0, 0, 1, 1], [], []>} : vector<8x128xbf16>, vector<128x6xbf16>, vector<8x6xf32> -> vector<8x6xf32>
    %c0_21 = arith.constant 0 : index
    %c0_22 = arith.constant 0 : index
    %28 = vector.load %arg9[%c0_21, %c0_22] : memref<1x6xf32, #tpu.memory_space<vmem>>, vector<1x6xf32>
    %29 = vector.broadcast %28 : vector<1x6xf32> to vector<8x6xf32>
    %30 = arith.addf %27, %29 : vector<8x6xf32>
    %c0_23 = arith.constant 0 : index
    %c0_24 = arith.constant 0 : index
    %31 = vector.load %arg10[%c0_23, %c0_24] : memref<8x6xf32, #tpu.memory_space<vmem>>, vector<8x6xf32>
    tpu.vector_store %arg10[%c0_23, %c0_24], %30 {strides = array<i32>} : memref<8x6xf32, #tpu.memory_space<vmem>>, vector<8x6xf32>,
    return
  }
  func.func @transform_0(%arg0: i32) -> (i32, i32) {
    %c0_i32 = arith.constant 0 : i32
    %c0_i32_0 = arith.constant 0 : i32
    return %arg0, %c0_i32 : i32, i32
  }
  func.func @transform_1(%arg0: i32) -> (i32, i32) {
    %c0_i32 = arith.constant 0 : i32
    %c0_i32_0 = arith.constant 0 : i32
    %c0_i32_1 = arith.constant 0 : i32
    return %c0_i32, %c0_i32_0 : i32, i32
  }
  func.func @transform_2(%arg0: i32) -> (i32, i32) {
    %c0_i32 = arith.constant 0 : i32
    %c0_i32_0 = arith.constant 0 : i32
    %c0_i32_1 = arith.constant 0 : i32
    return %c0_i32, %c0_i32_0 : i32, i32
  }
  func.func @transform_3(%arg0: i32) -> (i32, i32) {
    %c0_i32 = arith.constant 0 : i32
    %c0_i32_0 = arith.constant 0 : i32
    %c0_i32_1 = arith.constant 0 : i32
    return %c0_i32, %c0_i32_0 : i32, i32
  }
  func.func @transform_4(%arg0: i32) -> (i32, i32) {
    %c0_i32 = arith.constant 0 : i32
    %c0_i32_0 = arith.constant 0 : i32
    %c0_i32_1 = arith.constant 0 : i32
    return %c0_i32, %c0_i32_0 : i32, i32
  }
  func.func @transform_5(%arg0: i32) -> (i32, i32) {
    %c0_i32 = arith.constant 0 : i32
    %c0_i32_0 = arith.constant 0 : i32
    %c0_i32_1 = arith.constant 0 : i32
    return %c0_i32, %c0_i32_0 : i32, i32
  }
  func.func @transform_6(%arg0: i32) -> (i32, i32) {
    %c0_i32 = arith.constant 0 : i32
    %c0_i32_0 = arith.constant 0 : i32
    %c0_i32_1 = arith.constant 0 : i32
    return %c0_i32, %c0_i32_0 : i32, i32
  }
  func.func @transform_7(%arg0: i32) -> (i32, i32) {
    %c0_i32 = arith.constant 0 : i32
    %c0_i32_0 = arith.constant 0 : i32
    %c0_i32_1 = arith.constant 0 : i32
    return %c0_i32, %c0_i32_0 : i32, i32
  }
  func.func @transform_8(%arg0: i32) -> (i32, i32) {
    %c0_i32 = arith.constant 0 : i32
    %c0_i32_0 = arith.constant 0 : i32
    %c0_i32_1 = arith.constant 0 : i32
    return %c0_i32, %c0_i32_0 : i32, i32
  }
  func.func @transform_9(%arg0: i32) -> (i32, i32) {
    %c0_i32 = arith.constant 0 : i32
    %c0_i32_0 = arith.constant 0 : i32
    return %arg0, %c0_i32 : i32, i32
  }
}

</mosaic_0001>

<bundles_post_ra>
// kernel: mlp_planner_forward.1
= control target key start
LH: loop header
LB: loop body
LE: loop exit
PB: predicated region body
PF: predicated region fallthrough
CT: control target
= control target key end

     0   :  { %vm59_vm0 = vcmask 1043456   ;;  %v621_v0 = vmov 0.0   ;;  %vm622_vm1 = vmmov 0   ;;  %vm55_vm2 = vcmask 326656   ;;  %s808_s1 = inlined_call_operand.vmem [shape: bf16[40,128], index: 1, kind: input, shape index: {}]   ;;  %s809_s3 = inlined_call_operand.vmem [shape: bf16[128,128], index: 3, kind: input, shape index: {}]   ;;  %s810_s0 = inlined_call_operand.vmem [shape: f32[8,40], index: 0, kind: input, shape index: {}]   ;;  %s811_s5 = inlined_call_operand.vmem [shape: bf16[128,128], index: 5, kind: input, shape index: {}]   ;;  %s812_s2 = inlined_call_operand.vmem [shape: bf16[1,128], index: 2, kind: input, shape index: {}]   ;;  %s813_s7 = inlined_call_operand.vmem [shape: bf16[128,6], index: 7, kind: input, shape index: {}]   ;;  %s814_s4 = inlined_call_operand.vmem [shape: bf16[1,128], index: 4, kind: input, shape index: {}]   ;;  %s815_s6 = inlined_call_operand.vmem [shape: bf16[1,128], index: 6, kind: input, shape index: {}]   ;;  %s816_s8 = inlined_call_operand.vmem [shape: f32[1,6], index: 8, kind: input, shape index: {}]   ;;  %s817_s9 = inlined_call_operand.vmem [shape: f32[8,6], index: 9, kind: output, shape index: {}]  }
   0x1   :  { %521 = vmatprep.subr.bf16.mxu0 %v621_v0  ;;  %v594_v1 = vld [vmem:[%s808_s1 + $0x10] ss:$0 sps:$4 sm:$0xff]   ;;  %527 = vmatprep.mubr.msk.bf16.mxu0 %vm622_vm1, %v621_v0  ;;  %v595_v3 = vld [vmem:[%s808_s1 + $0x8] sm:$0xff]   ;;  %v597_v4 = vld [vmem:[%s809_s3 + $0x38] sm:$0xff]   ;;  %v108_v21 = vlaneseq  ;;  %v623_v32 = vmov 0   ;;  %vm455_vm3 = vcmask 48128  }
   0x2   :  { %531 = vmatprep.subr.bf16.mxu1 %v621_v0  ;;  %547 = vmatprep.mubr.msk.bf16.mxu1 %vm622_vm1, %v621_v0  ;;  %v61_v2 = vsel %vm59_vm0, %v594_v1, 0  ;;  %v598_v5 = vld [vmem:[%s809_s3 + $0x30] sm:$0xff]   ;;  %v596_v6 = vld [vmem:[%s808_s1] sm:$0xff]   ;;  %v599_v8 = vld [vmem:[%s809_s3 + $0x28] sm:$0xff]  }
   0x3   :  { %522 = vmatpush3.bf16.msra.mxu0 %v61_v2  ;;  %532 = vmatpush3.bf16.msra.mxu1 %v597_v4  ;;  %v33_v7 = vld [vmem:[%s810_s0] sm:$0xff]  ;;  %v601_v11 = vld [vmem:[%s809_s3 + $0x18] sm:$0xff]   ;;  %v602_v12 = vld [vmem:[%s809_s3 + $0x10] sm:$0xff]   ;;  %v109_v22 = vshrl.u32 %v108_v21, 7 }
   0x4   :  { %523 = vmatprep.subr.bf16.mxu0 %v621_v0  ;;  %533 = vmatprep.subr.bf16.mxu1 %v621_v0  ;;  %v34_v9 = vpack.c.bf16 %v33_v7, %v33_v7  ;;  %v600_v10 = vld [vmem:[%s809_s3 + $0x20] sm:$0xff]   ;;  %v603_v13 = vld [vmem:[%s809_s3 + $0x8] sm:$0xff]   ;;  %v605_v15 = vld [vmem:[%s811_s5 + $0x38] sm:$0xff]  }
   0x5   :  { %v604_v14 = vld [vmem:[%s809_s3] sm:$0xff]   ;;  %v606_v16 = vld [vmem:[%s811_s5 + $0x30] sm:$0xff]   ;;  %v607_v17 = vld [vmem:[%s811_s5 + $0x28] sm:$0xff]   ;;  %v110_v25 = vsub.s32 0, %v109_v22 }
   0x6   :  { %v608_v18 = vld [vmem:[%s811_s5 + $0x20] sm:$0xff]   ;;  %v609_v19 = vld [vmem:[%s811_s5 + $0x18] sm:$0xff]   ;;  %v610_v20 = vld [vmem:[%s811_s5 + $0x10] sm:$0xff]  }
   0x7   :  { %524 = vmatpush3.bf16.msra.mxu0 %v595_v3  ;;  %534 = vmatpush3.bf16.msra.mxu1 %v598_v5  ;;  %v104_v23 = vld [vmem:[%s812_s2] sm:$0x1]  ;;  %v611_v35 = vld [vmem:[%s811_s5 + $0x8] sm:$0xff]   ;;  %v613_v37 = vld [vmem:[%s813_s7 + $0x38] sm:$0xff]  }
   0x8   :  { %525 = vmatprep.subr.bf16.mxu0 %v621_v0  ;;  %535 = vmatprep.subr.bf16.mxu1 %v621_v0  ;;  %v106_v24 = vpack.i.b16 %v104_v23, %v104_v23  ;;  %v612_v36 = vld [vmem:[%s811_s5] sm:$0xff]   ;;  %v614_v38 = vld [vmem:[%s813_s7 + $0x30] sm:$0xff]   ;;  %v615_v39 = vld [vmem:[%s813_s7 + $0x28] sm:$0xff]  }
   0x9   :  { %v616_v40 = vld [vmem:[%s813_s7 + $0x20] sm:$0xff]   ;;  %v617_v41 = vld [vmem:[%s813_s7 + $0x18] sm:$0xff]   ;;  %v618_v42 = vld [vmem:[%s813_s7 + $0x10] sm:$0xff]  }
   0xa   :  { %v111_v26 = vrot.slane %v106_v24, %v110_v25  ;;  %v219_v43 = vld [vmem:[%s814_s4] sm:$0x1]  ;;  %v619_v53 = vld [vmem:[%s813_s7 + $0x8] sm:$0xff]  }
   0xb   :  { %526 = vmatpush3.bf16.msra.mxu0 %v596_v6  ;;  %536 = vmatpush3.bf16.msra.mxu1 %v599_v8  ;;  %v221_v44 = vpack.i.b16 %v219_v43, %v219_v43  ;;  %v620_v54 = vld [vmem:[%s813_s7] sm:$0xff]  }
   0xc   :  { %551 = vmatprep.subr.bf16.mxu0 %v621_v0  ;;  %537 = vmatprep.subr.bf16.mxu1 %v621_v0  ;;  %v334_v55 = vld [vmem:[%s815_s6] sm:$0x1] }
   0xd   :  { %v226_v45 = vrot.slane %v221_v44, %v110_v25  ;;  %v336_v56 = vpack.i.b16 %v334_v55, %v334_v55 }
   0xe   :  { %528 = vmatmul.mubr.msk.bf16.vlgmr.msra.gmra.mxu0 %vm55_vm2, %v34_v9 }
   0xf   :  { %567 = vmatprep.mubr.msk.bf16.mxu0 %vm622_vm1, %v621_v0  ;;  %538 = vmatpush3.bf16.msra.mxu1 %v600_v10  ;;  %v341_v57 = vrot.slane %v336_v56, %v110_v25 }
  0x10   :  { %539 = vmatprep.subr.bf16.mxu1 %v621_v0  ;;  %552 = vmatpush3.bf16.msra.mxu0 %v605_v15 }
  0x11   :  { %553 = vmatprep.subr.bf16.mxu0 %v621_v0 }
  0x13   :  { %540 = vmatpush3.bf16.msra.mxu1 %v601_v11 }
  0x14   :  { %541 = vmatprep.subr.bf16.mxu1 %v621_v0  ;;  %554 = vmatpush3.bf16.msra.mxu0 %v606_v16 }
  0x15   :  { %555 = vmatprep.subr.bf16.mxu0 %v621_v0 }
  0x17   :  { %542 = vmatpush3.bf16.msra.mxu1 %v602_v12 }
  0x18   :  { %543 = vmatprep.subr.bf16.mxu1 %v621_v0  ;;  %556 = vmatpush3.bf16.msra.mxu0 %v607_v17 }
  0x19   :  { %557 = vmatprep.subr.bf16.mxu0 %v621_v0 }
  0x1b   :  { %544 = vmatpush3.bf16.msra.mxu1 %v603_v13 }
  0x1c   :  { %545 = vmatprep.subr.bf16.mxu1 %v621_v0  ;;  %558 = vmatpush3.bf16.msra.mxu0 %v608_v18 }
  0x1d   :  { %559 = vmatprep.subr.bf16.mxu0 %v621_v0 }
  0x1f   :  { %546 = vmatpush3.bf16.msra.mxu1 %v604_v14 }
  0x20   :  { %571 = vmatprep.subr.bf16.mxu1 %v621_v0  ;;  %560 = vmatpush3.bf16.msra.mxu0 %v609_v19 }
  0x21   :  { %561 = vmatprep.subr.bf16.mxu0 %v621_v0 }
  0x24   :  { %562 = vmatpush3.bf16.msra.mxu0 %v610_v20 }
  0x25   :  { %563 = vmatprep.subr.bf16.mxu0 %v621_v0 }
  0x28   :  { %564 = vmatpush3.bf16.msra.mxu0 %v611_v35 }
  0x29   :  { %565 = vmatprep.subr.bf16.mxu0 %v621_v0 }
  0x2c   :  { %566 = vmatpush3.bf16.msra.mxu0 %v612_v36 }
  0xce   :  { %v97_v27 = vpop.f32.mrf.mxu0 }
  0xcf   :  { %v103_v28 = vpack.c.bf16 %v97_v27, %v97_v27 }
  0xd0   :  { %v529_v29 = vpop.f32.mrf.mxu0 }
  0xd1   :  { %v112_v30 = vadd.bf16 %v111_v26, %v103_v28 }
  0xd2   :  { %v100_v31 = vpop.f32.mrf.mxu0 }
  0xd3   :  { %v113_v33 = vmax.bf16 %v623_v32, %v112_v30 }
  0xd4   :  { %v530_v34 = vpop.f32.mrf.mxu0 }
  0xd5   :  { %548 = vmatmul.mubr.bf16.vlgmr.msra.gmra.mxu1 %v113_v33 }
  0xd6   :  { %587 = vmatprep.mubr.msk.bf16.mxu1 %vm622_vm1, %v621_v0  ;;  %572 = vmatpush3.bf16.msra.mxu1 %v613_v37 }
  0xd7   :  { %573 = vmatprep.subr.bf16.mxu1 %v621_v0 }
  0xda   :  { %574 = vmatpush3.bf16.msra.mxu1 %v614_v38 }
  0xdb   :  { %575 = vmatprep.subr.bf16.mxu1 %v621_v0 }
  0xde   :  { %576 = vmatpush3.bf16.msra.mxu1 %v615_v39 }
  0xdf   :  { %577 = vmatprep.subr.bf16.mxu1 %v621_v0 }
  0xe2   :  { %578 = vmatpush3.bf16.msra.mxu1 %v616_v40 }
  0xe3   :  { %579 = vmatprep.subr.bf16.mxu1 %v621_v0 }
  0xe6   :  { %580 = vmatpush3.bf16.msra.mxu1 %v617_v41 }
  0xe7   :  { %581 = vmatprep.subr.bf16.mxu1 %v621_v0 }
  0xea   :  { %582 = vmatpush3.bf16.msra.mxu1 %v618_v42 }
  0xeb   :  { %583 = vmatprep.subr.bf16.mxu1 %v621_v0 }
  0xee   :  { %584 = vmatpush3.bf16.msra.mxu1 %v619_v53 }
  0xef   :  { %585 = vmatprep.subr.bf16.mxu1 %v621_v0  ;;  %v481_v0 = vld [vmem:[%s816_s8] ss:$0 sm:$0xff] }
  0xf2   :  { %586 = vmatpush3.bf16.msra.mxu1 %v620_v54 }
 0x195   :  { %v212_v46 = vpop.f32.mrf.mxu1 }
 0x196   :  { %v218_v47 = vpack.c.bf16 %v212_v46, %v212_v46 }
 0x197   :  { %v549_v48 = vpop.f32.mrf.mxu1 }
 0x198   :  { %v227_v49 = vadd.bf16 %v226_v45, %v218_v47 }
 0x199   :  { %v215_v50 = vpop.f32.mrf.mxu1 }
 0x19a   :  { %v228_v51 = vmax.bf16 %v623_v32, %v227_v49 }
 0x19b   :  { %v550_v52 = vpop.f32.mrf.mxu1 }
 0x19c   :  { %568 = vmatmul.mubr.bf16.vlgmr.msra.gmra.mxu0 %v228_v51 }
 0x25c   :  { %v327_v58 = vpop.f32.mrf.mxu0 }
 0x25d   :  { %v333_v59 = vpack.c.bf16 %v327_v58, %v327_v58 }
 0x25e   :  { %v569_v60 = vpop.f32.mrf.mxu0 }
 0x25f   :  { %v342_v61 = vadd.bf16 %v341_v57, %v333_v59 }
 0x260   :  { %v330_v62 = vpop.f32.mrf.mxu0 }
 0x261   :  { %v343_v63 = vmax.bf16 %v623_v32, %v342_v61 }
 0x262   :  { %v570_v1 = vpop.f32.mrf.mxu0 }
 0x263   :  { %588 = vmatmul.mubr.bf16.vlgmr.msra.gmra.mxu1 %v343_v63 }
 0x323   :  { %v449_v2 = vpop.f32.mrf.mxu1 }
 0x324   :  { %v450_v3 = vadd.f32 %v481_v0, %v449_v2 }
 0x325   :  { %v589_v4 = vpop.f32.mrf.mxu1 }
 0x326   :  { %456 = vst.msk [vmem:[%s817_s9] sm:$0xff] %vm455_vm3, %v450_v3 }
 0x327   :  { %v452_v5 = vpop.f32.mrf.mxu1 }
 0x329   :  { %v590_v6 = vpop.f32.mrf.mxu1 }

</bundles_post_ra>
